<compile_context>
chip_gen: v6e
topology: v6e:2x2x1
jax: 0.10.0
libtpu: 0.0.40
codegen_flags: <defaults>
</compile_context>

<pallas_src>
import functools

import numpy as np
import jax
import jax.numpy as jnp
from jax import lax
from jax.experimental import pallas as pl
from jax.experimental.pallas import tpu as pltpu

LRELU_SLOPE = 0.2
SQRT2 = float(np.sqrt(2.0))


# ------------------------------ Pallas kernels --------------------------------

def _mbstd_kernel(x_ref, o_ref, acc_ref, *, inv_chw):
    """Minibatch-std statistic, pipelined over CHW chunks.

    x_ref : (G, M, chunk) f32 -- sample n lives at [n // M, n % M, :]
    o_ref : (M, 1)        f32 -- mean-over-(c,h,w) of per-feature group stddev
    acc_ref: (M, 1)       f32 scratch accumulator (sum of std over chunks)
    """
    i = pl.program_id(0)

    @pl.when(i == 0)
    def _():
        acc_ref[...] = jnp.zeros_like(acc_ref)

    xg = x_ref[...]                                    # (G, M, chunk)
    mu = jnp.mean(xg, axis=0, keepdims=True)
    d = xg - mu
    var = jnp.mean(d * d, axis=0)                      # (M, chunk)
    std = jnp.sqrt(var + 1e-8)
    acc_ref[...] += jnp.sum(std, axis=1, keepdims=True)

    @pl.when(i == pl.num_programs(0) - 1)
    def _():
        o_ref[...] = acc_ref[...] * inv_chw


def _conv3x3_kernel(xp_ref, w_ref, t_ref, y_ref, b_ref, o_ref, lhs_ref,
                    *, B, H, W, C):
    """Fused (mbstd channel + 3x3 'same' conv + bias + lrelu*sqrt2), B samples/step.

    xp_ref : (B, H+2, W+2, C) bf16  zero-padded NHWC activation (real channels)
    w_ref  : (9*C, Cout)      bf16  conv taps, row index = (3*dy + dx)*C + ci
    t_ref  : (H*W, Cout)      f32   border-aware mbstd tap-sum tensor
    y_ref  : (B, 1, 1)        f32   per-sample minibatch-std scalar
    b_ref  : (1, Cout)        f32   conv bias
    o_ref  : (B, H*W, Cout)   bf16  conv activation, (p=h*W+w, c) order
    lhs_ref: (B*H*W, 9*C)     bf16  VMEM im2col scratch
    """
    HW = H * W
    # Assemble the im2col LHS once in VMEM: row (n*HW + h*W + w), col (tap*C + ci).
    for dy in range(3):
        for dx in range(3):
            tap = 3 * dy + dx
            xs = xp_ref[:, dy:dy + H, dx:dx + W, :]           # (B, H, W, C) bf16
            lhs_ref[:, tap * C:(tap + 1) * C] = xs.reshape(B * HW, C)

    # One big MXU matmul for the whole block.
    acc = jnp.dot(lhs_ref[...], w_ref[...],
                  preferred_element_type=jnp.float32)          # (B*HW, Cout) f32
    acc = acc.reshape(B, HW, -1)

    # mbstd channel contribution (rank-1 in y, border-aware) + bias, hoisted:
    # computed once per block via broadcasting, no per-row loop.
    acc = acc + y_ref[...] * t_ref[...][None] + b_ref[...][None]
    acc = jnp.maximum(acc, LRELU_SLOPE * acc) * SQRT2
    o_ref[...] = acc.astype(o_ref.dtype)


def _head_kernel(x_ref, fcw_ref, fcb_ref, ow_ref, ob_ref, cmap_ref, o_ref, *,
                 cmap_scale):
    """Fused fc (lrelu, gain sqrt2) -> out (linear) -> cmap projection."""
    h = jnp.dot(x_ref[...], fcw_ref[...], preferred_element_type=jnp.float32)
    h = h + fcb_ref[...]
    h = jnp.maximum(h, LRELU_SLOPE * h) * SQRT2
    o = jnp.dot(h.astype(jnp.bfloat16), ow_ref[...],
                preferred_element_type=jnp.float32) + ob_ref[...]
    o_ref[...] = jnp.sum(o * cmap_ref[...], axis=1, keepdims=True) * cmap_scale


# ------------------------------ tiling helpers ---------------------------------

def _pick_chunk(total, target=2048):
    """Largest multiple-of-128 divisor of `total` that is <= target (else total)."""
    if total <= target:
        return total
    best = total
    k = 128
    while k <= target:
        if total % k == 0:
            best = k
        k += 128
    return best


def _pick_sample_block(n, hw, target_rows=256):
    """Samples per conv grid step: B*H*W >= ~256 MXU rows, grid >= 2 if possible."""
    b = max(1, min(n, (target_rows + hw - 1) // hw))
    while n % b != 0:
        b -= 1
    if n // b < 2 and b > 1:
        b2 = b - 1
        while b2 > 1 and n % b2 != 0:
            b2 -= 1
        b = b2
    return b


def _pick_row_block(n):
    """Row block for the head: divisor of N, <=128, sublane-aligned split if it
    lets the grid reach 2 steps (v7x megacore)."""
    tn = min(n, 128)
    while n % tn != 0:
        tn -= 1
    if n // tn < 2:
        half = tn // 2
        if half >= 8 and half % 8 == 0 and n % half == 0:
            tn = half
    return tn


# Single-buffer grid-invariant weight blocks; fall back if unsupported.
_SINGLE_BUFFER_OK = [True]


def _weight_spec_factory(single_buffer):
    if single_buffer:
        def make(shape, index_map):
            return pl.BlockSpec(shape, index_map, pipeline_mode=pl.Buffered(1))
    else:
        def make(shape, index_map):
            return pl.BlockSpec(shape, index_map)
    return make


def _run_with_fallback(fn, *args):
    if _SINGLE_BUFFER_OK[0]:
        try:
            return fn(*args, single_buffer=True)
        except Exception:
            _SINGLE_BUFFER_OK[0] = False
    return fn(*args, single_buffer=False)


# ------------------------------ wrappers ----------------------------------------

def prepare_params(params, *, in_channels, resolution, mbstd_num_channels=1):
    """One-time parameter prep: gain scaling, bf16 cast, layout permutes."""
    assert mbstd_num_channels == 1
    C, R = in_channels, resolution
    w = params['conv_w'] * params['conv_gain']            # (Cout, C+1, 3, 3) f32
    Cout = w.shape[0]

    # Real-channel taps flattened to (9*C, Cout), row = (3*dy+dx)*C + ci, bf16.
    w_real = w[:, :C]                                     # (Cout, C, 3, 3)
    w9 = jnp.transpose(w_real, (2, 3, 1, 0)).reshape(9 * C, Cout).astype(jnp.bfloat16)

    # mbstd-channel tap-sum tensor T[p, co] = sum over in-bounds taps of
    # w[co, mbstd_ch, dy, dx] (zero padding => border pixels see fewer taps).
    # Rounded through bf16 to mirror bf16 conv-operand precision.
    w_mb = w[:, C].astype(jnp.bfloat16).astype(jnp.float32)    # (Cout, 3, 3)
    ind = jnp.pad(jnp.ones((R, R), jnp.float32), ((1, 1), (1, 1)))
    t_mb = jnp.zeros((R, R, Cout), jnp.float32)
    for dy in range(3):
        for dx in range(3):
            t_mb = t_mb + (ind[dy:dy + R, dx:dx + R][:, :, None] *
                           w_mb[:, dy, dx][None, None, :])
    t_mb = t_mb.reshape(R * R, Cout)                       # row p = h*W + w

    # fc weight permuted so it consumes the conv output in (h, w, c) row order.
    fc_w = params['fc_w'] * params['fc_gain']              # (Cfc, Cout*R*R), torch (c,h,w)
    Cfc = fc_w.shape[0]
    fc_wT = (fc_w.reshape(Cfc, Cout, R, R)
             .transpose(2, 3, 1, 0)
             .reshape(R * R * Cout, Cfc)).astype(jnp.bfloat16)

    out_w = params['out_w'] * params['out_gain']           # (D, Cfc)
    return dict(
        w9=w9,
        t_mb=t_mb,
        conv_b=params['conv_b'].reshape(1, Cout).astype(jnp.float32),
        fc_wT=fc_wT,
        fc_b=params['fc_b'].reshape(1, Cfc).astype(jnp.float32),
        out_wT=out_w.T.astype(jnp.bfloat16),
        out_b=params['out_b'].reshape(1, -1).astype(jnp.float32),
    )


def minibatch_std_stat(x, group_size=4):
    """Per-sample minibatch-std scalar (num_channels == 1), chunked over CHW."""
    N, C, H, W = x.shape
    G = min(group_size, N)
    assert N % G == 0
    M = N // G
    CHW = C * H * W
    chunk = _pick_chunk(CHW)
    xg = x.reshape(G, M, CHW)                              # zero-copy reshape
    kern = functools.partial(_mbstd_kernel, inv_chw=float(1.0 / CHW))
    y = pl.pallas_call(
        kern,
        out_shape=jax.ShapeDtypeStruct((M, 1), jnp.float32),
        grid=(CHW // chunk,),
        in_specs=[pl.BlockSpec((G, M, chunk), lambda i: (0, 0, i))],
        out_specs=pl.BlockSpec((M, 1), lambda i: (0, 0)),
        scratch_shapes=[pltpu.VMEM((M, 1), jnp.float32)],
        compiler_params=pltpu.CompilerParams(dimension_semantics=("arbitrary",)),
        cost_estimate=pl.CostEstimate(flops=5 * G * M * CHW, transcendentals=0,
                                      bytes_accessed=xg.size * 4 + M * 4),
    )(xg)                                                  # (M, 1)
    # sample n -> group slot n % M  (matches torch reshape(G, M, ...) + repeat(G))
    return jnp.tile(y, (G, 1))                             # (N, 1)


def conv3x3_mbstd_lrelu(x, y_stat, prep, *, single_buffer=True):
    """3x3 'same' conv (+ fused mbstd channel) + bias + lrelu*sqrt2.

    Returns activation of shape (N, H*W, Cout) bf16, row order p = h*W + w.
    """
    N, C, H, W = x.shape
    HW = H * W
    w9 = prep['w9']                                        # (9*C, Cout)
    Cout = w9.shape[-1]
    Hp, Wp = H + 2, W + 2
    B = _pick_sample_block(N, HW)

    # Single fused XLA producer: NCHW -> padded NHWC -> bf16.  No HBM im2col.
    # TODO(synk): could be fused into the mbstd pallas_call to save one f32 pass
    # of x over HBM (kept in XLA here for lowering robustness of the transpose).
    xp = jnp.pad(jnp.transpose(x, (0, 2, 3, 1)),
                 ((0, 0), (1, 1), (1, 1), (0, 0))).astype(jnp.bfloat16)
    y3 = y_stat.reshape(N, 1, 1)

    wspec = _weight_spec_factory(single_buffer)
    kern = functools.partial(_conv3x3_kernel, B=B, H=H, W=W, C=C)
    flops = 2 * N * HW * 9 * C * Cout
    bytes_accessed = (xp.size * 2 + w9.size * 2 + prep['t_mb'].size * 4 +
                      N * 4 + N * HW * Cout * 2)
    return pl.pallas_call(
        kern,
        out_shape=jax.ShapeDtypeStruct((N, HW, Cout), jnp.bfloat16),
        grid=(N // B,),
        in_specs=[
            pl.BlockSpec((B, Hp, Wp, C), lambda n: (n, 0, 0, 0)),
            wspec((9 * C, Cout), lambda n: (0, 0)),
            wspec((HW, Cout), lambda n: (0, 0)),
            pl.BlockSpec((B, 1, 1), lambda n: (n, 0, 0)),
            wspec((1, Cout), lambda n: (0, 0)),
        ],
        out_specs=pl.BlockSpec((B, HW, Cout), lambda n: (n, 0, 0)),
        scratch_shapes=[pltpu.VMEM((B * HW, 9 * C), jnp.bfloat16)],
        compiler_params=pltpu.CompilerParams(
            dimension_semantics=("parallel",),
            vmem_limit_bytes=64 * 1024 * 1024),
        cost_estimate=pl.CostEstimate(flops=flops, transcendentals=0,
                                      bytes_accessed=bytes_accessed),
    )(xp, w9, prep['t_mb'], y3, prep['conv_b'])


def head_fc_out_cmap(xflat, cmap, prep, cmap_dim, *, single_buffer=True):
    """Fused fc(lrelu) -> out(linear) -> (x*cmap).sum(1)/sqrt(cmap_dim)."""
    N, K = xflat.shape
    assert K == prep['fc_wT'].shape[0]
    Cfc = prep['fc_wT'].shape[1]
    D = prep['out_wT'].shape[1]
    TN = _pick_row_block(N)

    wspec = _weight_spec_factory(single_buffer)
    kern = functools.partial(_head_kernel,
                             cmap_scale=float(1.0 / np.sqrt(cmap_dim)))
    flops = 2 * N * K * Cfc + 2 * N * Cfc * D + 2 * N * D
    bytes_accessed = (xflat.size * 2 + prep['fc_wT'].size * 2 +
                      prep['out_wT'].size * 2 + cmap.size * 4 + N * 4)
    return pl.pallas_call(
        kern,
        out_shape=jax.ShapeDtypeStruct((N, 1), jnp.float32),
        grid=(N // TN,),
        in_specs=[
            pl.BlockSpec((TN, K), lambda i: (i, 0)),
            wspec((K, Cfc), lambda i: (0, 0)),
            wspec((1, Cfc), lambda i: (0, 0)),
            wspec((Cfc, D), lambda i: (0, 0)),
            wspec((1, D), lambda i: (0, 0)),
            pl.BlockSpec((TN, D), lambda i: (i, 0)),
        ],
        out_specs=pl.BlockSpec((TN, 1), lambda i: (i, 0)),
        compiler_params=pltpu.CompilerParams(
            dimension_semantics=("parallel",),
            vmem_limit_bytes=64 * 1024 * 1024),
        cost_estimate=pl.CostEstimate(flops=flops, transcendentals=0,
                                      bytes_accessed=bytes_accessed),
    )(xflat, prep['fc_wT'], prep['fc_b'], prep['out_wT'], prep['out_b'],
      cmap.astype(jnp.float32))


def discriminator_epilogue_forward(prep, x, img, cmap, *, in_channels, cmap_dim,
                                   resolution, mbstd_group_size=4,
                                   mbstd_num_channels=1):
    """DiscriminatorEpilogue.forward for architecture='resnet'/'orig' (default)."""
    # TODO(synk): architecture='skip' fromrgb 1x1-conv branch not implemented
    # (the default 'resnet'/'orig' path ignores `img`).
    del img
    assert cmap_dim > 0 and mbstd_num_channels == 1
    x = x.astype(jnp.float32)
    assert x.shape[1:] == (in_channels, resolution, resolution)

    y_stat = minibatch_std_stat(x, group_size=mbstd_group_size)      # (N, 1) f32
    # Round the mbstd scalar through bf16 so it matches the bf16 precision of
    # the other conv operands (the conv itself keeps f32 accumulation).
    y_stat = y_stat.astype(jnp.bfloat16).astype(jnp.float32)

    conv_act = _run_with_fallback(conv3x3_mbstd_lrelu, x, y_stat, prep)
    N = x.shape[0]
    xflat = conv_act.reshape(N, -1)                      # free reshape, (h,w,c) order
    return _run_with_fallback(head_fc_out_cmap, xflat, cmap, prep, cmap_dim)


# ------------------------------ reference ---------------------------------------

def reference_forward(x, img, cmap, p, *, group_size=4):
    """Pure-JAX reference with the same bf16-operand / f32-accumulate precision
    as the Pallas kernels (matmul/conv operands rounded through bf16)."""
    del img
    N, C, H, W = x.shape
    G = min(group_size, N)
    M = N // G
    y = x.reshape(G, M, 1, C, H, W)
    y = y - y.mean(axis=0)
    y = jnp.sqrt((y * y).mean(axis=0) + 1e-8)
    y = y.mean(axis=(2, 3, 4))                           # (M, 1)
    y = jnp.tile(y.reshape(M, 1, 1, 1), (G, 1, H, W))
    xc = jnp.concatenate([x, y], axis=1)

    def r(v):  # bf16 operand rounding, math stays f32
        return v.astype(jnp.bfloat16).astype(jnp.float32)

    w = p['conv_w'] * p['conv_gain']
    z = lax.conv_general_dilated(
        r(xc), r(w), (1, 1), 'SAME', dimension_numbers=('NCHW', 'OIHW', 'NCHW'),
        precision=lax.Precision.HIGHEST)
    z = z + p['conv_b'][None, :, None, None]
    z = jnp.maximum(z, LRELU_SLOPE * z) * SQRT2

    zf = z.reshape(N, -1)
    h = jnp.dot(r(zf), r(p['fc_w'] * p['fc_gain']).T,
                precision=lax.Precision.HIGHEST) + p['fc_b']
    h = jnp.maximum(h, LRELU_SLOPE * h) * SQRT2
    o = jnp.dot(r(h), r(p['out_w'] * p['out_gain']).T,
                precision=lax.Precision.HIGHEST) + p['out_b']
    D = cmap.shape[1]
    return jnp.sum(o * cmap, axis=1, keepdims=True) * (1.0 / np.sqrt(D))


# ------------------------------ main ---------------------------------------------

if __name__ == "__main__":
    # batch, in_channels, resolution, cmap_dim, img_channels
    N, C, R, D, IMGC = 16, 16, 16, 16, 3
    Cin_total = C + 1                         # in_channels + mbstd_num_channels

    key = jax.random.PRNGKey(0)
    ks = jax.random.split(key, 9)
    params = dict(
        conv_w=jax.random.normal(ks[0], (C, Cin_total, 3, 3), jnp.float32),
        conv_b=0.1 * jax.random.normal(ks[1], (C,), jnp.float32),
        conv_gain=float(1.0 / np.sqrt(Cin_total * 3 * 3)),
        fc_w=jax.random.normal(ks[2], (C, C * R * R), jnp.float32),
        fc_b=0.1 * jax.random.normal(ks[3], (C,), jnp.float32),
        fc_gain=float(1.0 / np.sqrt(C * R * R)),
        out_w=jax.random.normal(ks[4], (D, C), jnp.float32),
        out_b=0.1 * jax.random.normal(ks[5], (D,), jnp.float32),
        out_gain=float(1.0 / np.sqrt(C)),
    )

    x = jax.random.normal(ks[6], (N, C, R, R), jnp.float32)
    img = jax.random.normal(ks[7], (N, IMGC, R, R), jnp.float32)
    cmap = jax.random.normal(ks[8], (N, D), jnp.float32)

    prep = prepare_params(params, in_channels=C, resolution=R)
    out = discriminator_epilogue_forward(prep, x, img, cmap, in_channels=C,
                                         cmap_dim=D, resolution=R)
    out = jax.block_until_ready(out)
    assert out.shape == (N, 1) and out.dtype == jnp.float32

    ref = reference_forward(x, img, cmap, params)
    np.testing.assert_allclose(np.asarray(out), np.asarray(ref), rtol=1e-2, atol=1e-2)

    print("KERNEL_OK")
</pallas_src>

<mosaic_0001>
module attributes {stable_mosaic.version = 11 : i64} {
  func.func @_mbstd_kernel(%arg0: i32, %arg1: memref<4x4x2048xf32, #tpu.memory_space<vmem>>, %arg2: memref<4x1xf32, #tpu.memory_space<vmem>>, %arg3: memref<4x1xf32, #tpu.memory_space<vmem>>) attributes {dimension_semantics = [#tpu.dimension_semantics<arbitrary>], iteration_bounds = array<i64: 2>, scalar_prefetch = 0 : i64, scratch_operands = 1 : i64, tpu.core_type = #tpu.core_type<tc>, window_params = [{transform_indices = @transform_0, window_bounds = array<i64: 4, 4, 2048>}, {pipeline_mode = #tpu.pipeline_mode<synchronous>, transform_indices = @transform_1, window_bounds = array<i64: 4, 1>}]} {
    %c0_i32 = arith.constant 0 : i32
    %0 = arith.cmpi eq, %arg0, %c0_i32 : i32
    %1 = arith.extui %0 : i1 to i32
    %c0_i32_0 = arith.constant 0 : i32
    %2 = arith.cmpi ne, %1, %c0_i32_0 : i32
    scf.if %2 {
      %cst_13 = arith.constant 0.000000e+00 : f32
      %25 = vector.broadcast %cst_13 : f32 to vector<4x1xf32>
      %c0_14 = arith.constant 0 : index
      %c0_15 = arith.constant 0 : index
      %26 = vector.load %arg3[%c0_14, %c0_15] : memref<4x1xf32, #tpu.memory_space<vmem>>, vector<4x1xf32>
      tpu.vector_store %arg3[%c0_14, %c0_15], %25 {strides = array<i32>} : memref<4x1xf32, #tpu.memory_space<vmem>>, vector<4x1xf32>,
    } else {
    }
    %c0 = arith.constant 0 : index
    %c0_1 = arith.constant 0 : index
    %c0_2 = arith.constant 0 : index
    %3 = vector.load %arg1[%c0, %c0_1, %c0_2] : memref<4x4x2048xf32, #tpu.memory_space<vmem>>, vector<4x4x2048xf32>
    %cst = arith.constant dense<0.000000e+00> : vector<4x2048xf32>
    %4 = vector.multi_reduction <add>, %3, %cst [0] : vector<4x4x2048xf32> to vector<4x2048xf32>
    %5 = vector.shape_cast %4 : vector<4x2048xf32> to vector<1x4x2048xf32>
    %cst_3 = arith.constant 4.000000e+00 : f32
    %6 = vector.broadcast %cst_3 : f32 to vector<1x4x2048xf32>
    %7 = arith.divf %5, %6 : vector<1x4x2048xf32>
    %8 = vector.broadcast %7 : vector<1x4x2048xf32> to vector<4x4x2048xf32>
    %9 = arith.subf %3, %8 : vector<4x4x2048xf32>
    %10 = arith.mulf %9, %9 : vector<4x4x2048xf32>
    %cst_4 = arith.constant dense<0.000000e+00> : vector<4x2048xf32>
    %11 = vector.multi_reduction <add>, %10, %cst_4 [0] : vector<4x4x2048xf32> to vector<4x2048xf32>
    %cst_5 = arith.constant 4.000000e+00 : f32
    %12 = vector.broadcast %cst_5 : f32 to vector<4x2048xf32>
    %13 = arith.divf %11, %12 : vector<4x2048xf32>
    %cst_6 = arith.constant 9.99999993E-9 : f32
    %14 = vector.broadcast %cst_6 : f32 to vector<4x2048xf32>
    %15 = arith.addf %13, %14 : vector<4x2048xf32>
    %16 = math.sqrt %15 : vector<4x2048xf32>
    %c0_7 = arith.constant 0 : index
    %c0_8 = arith.constant 0 : index
    %17 = vector.load %arg3[%c0_7, %c0_8] : memref<4x1xf32, #tpu.memory_space<vmem>>, vector<4x1xf32>
    %cst_9 = arith.constant dense<0.000000e+00> : vector<4xf32>
    %18 = vector.multi_reduction <add>, %16, %cst_9 [1] : vector<4x2048xf32> to vector<4xf32>
    %19 = vector.shape_cast %18 : vector<4xf32> to vector<4x1xf32>
    %20 = arith.addf %17, %19 : vector<4x1xf32>
    %c0_10 = arith.constant 0 : index
    %c0_11 = arith.constant 0 : index
    %21 = vector.load %arg3[%c0_10, %c0_11] : memref<4x1xf32, #tpu.memory_space<vmem>>, vector<4x1xf32>
    tpu.vector_store %arg3[%c0_10, %c0_11], %20 {strides = array<i32>} : memref<4x1xf32, #tpu.memory_space<vmem>>, vector<4x1xf32>,
    %c1_i32 = arith.constant 1 : i32
    %22 = arith.cmpi eq, %arg0, %c1_i32 : i32
    %23 = arith.extui %22 : i1 to i32
    %c0_i32_12 = arith.constant 0 : i32
    %24 = arith.cmpi ne, %23, %c0_i32_12 : i32
    scf.if %24 {
      %c0_13 = arith.constant 0 : index
      %c0_14 = arith.constant 0 : index
      %25 = vector.load %arg3[%c0_13, %c0_14] : memref<4x1xf32, #tpu.memory_space<vmem>>, vector<4x1xf32>
      %cst_15 = arith.constant 2.44140625E-4 : f32
      %26 = vector.broadcast %cst_15 : f32 to vector<4x1xf32>
      %27 = arith.mulf %25, %26 : vector<4x1xf32>
      %c0_16 = arith.constant 0 : index
      %c0_17 = arith.constant 0 : index
      %28 = vector.load %arg2[%c0_16, %c0_17] : memref<4x1xf32, #tpu.memory_space<vmem>>, vector<4x1xf32>
      tpu.vector_store %arg2[%c0_16, %c0_17], %27 {strides = array<i32>} : memref<4x1xf32, #tpu.memory_space<vmem>>, vector<4x1xf32>,
    } else {
    }
    return
  }
  func.func @transform_0(%arg0: i32) -> (i32, i32, i32) {
    %c0_i32 = arith.constant 0 : i32
    %c0_i32_0 = arith.constant 0 : i32
    %c0_i32_1 = arith.constant 0 : i32
    return %c0_i32, %c0_i32_0, %arg0 : i32, i32, i32
  }
  func.func @transform_1(%arg0: i32) -> (i32, i32) {
    %c0_i32 = arith.constant 0 : i32
    %c0_i32_0 = arith.constant 0 : i32
    %c0_i32_1 = arith.constant 0 : i32
    return %c0_i32, %c0_i32_0 : i32, i32
  }
}

</mosaic_0001>

<bundles_post_ra>
// kernel: tpu_custom_call.1
= control target key start
LH: loop header
LB: loop body
LE: loop exit
PB: predicated region body
PF: predicated region fallthrough
CT: control target
= control target key end

     0   :  { %6 = vsyncpa [#allocation4], 0  ;;  %s2008_s0 = inlined_call_operand.hbm [shape: f32[4,4,4096], index: 0, kind: input, shape index: {}]   ;;  %s2009_s1 = inlined_call_operand.vmem [shape: f32[4,1], index: 1, kind: output, shape index: {}]  }
   0x1   :  { %8 = vsyncpa [#allocation4 + $0x1], 0  ;;  %s1117_s6 = smov 0   ;;  %s1119_s7 = smov 0  }
   0x2   :  { %s1121_s8 = smov 0   ;;  %s1123_s9 = smov 0  }
   0x3 LB: > { %s1136_s10 = sadd.s32 4294967295, %s1100_s9   ;;  %s1139_s11 = sadd.s32 1, %s1100_s9   ;;  %s1100_s9 = sphi %s1123_s9, %s2052_s9   ;;  %s1096_s8 = sphi %s1121_s8, %s2051_s8   ;;  %s1092_s7 = sphi %s1119_s7, %s2050_s7   ;;  %s1088_s6 = sphi %s1117_s6, %s2049_s6  }
   0x4   : > { %s18_s12 = ssub.s32 %s1100_s9, %s1139_s11  ;;  %s21_s13 = sadd.s32 1, %s1096_s8 }
   0x5   : > { %p19_p0 = scmp.eq.s32.totalorder %s18_s12, 0  ;;  %p28_p1 = scmp.ne.s32.totalorder %s1096_s8, %s1092_s7 }
   0x6   : > { %p29_p2 = scmp.eq.s32.totalorder %s1100_s9, 0  ;;  %p34_p3 = scmp.ne.s32.totalorder %s1092_s7, %s1088_s6 }
   0x7   : > { %s1149_s14 = scalar_select %p19_p0, %s1096_s8, %s21_s13  }
   0x8   : > { %p30_p4 = por %p29_p2, %p28_p1  ;;  %p35_p5 = scmp.eq.s32.totalorder %s1136_s10, 0 }
   0x9   : > { %p937_p6 = scmp.lt.s32.totalorder %s1100_s9, 2  ;;  %s79_s16 = sand.u32 1, %s1096_s8  }
   0xa   : > { %p1153_p7 = por %p35_p5, %p34_p3  ;;  %s921_s17 = sshll.u32 %s79_s16, 8 }
   0xb   : > { %s930_s18 = sshll.u32 %s1100_s9, 10  ;;  %s83_s22 = scalar_lea.vmem [#allocation3], %s921_s17 }
   0xc   : > { %s2016_s15 = scalar_select %p1153_p7, 1, 0 }
   0xd   : > { %s1162_s21 = scalar_lea.hbm %s2008_s0, %s930_s18  ;;  %s90_s23 = sshll.u32 %s83_s22, 4  ;;  %s1164_s23 = int_to_ptr.vmem [resolvable:$true] %s90_s23 }
   0xe   : > { %p1166_p8 = pnand %p937_p6, %p30_p4  ;;  %s1170_s25 = scalar_lea.sflag [#allocation4], %s79_s16 }
   0xf   : > { %s1038_s26 = scalar_lea.hbm %s1162_s21, 4096  ;;  %s1043_s29 = scalar_lea.hbm %s2008_s0, 8192 }
  0x10   : > { %p1039_p9 = scmp.ne.s32.totalorder %s1162_s21, %s1038_s26  ;;  %p1040_p10 = pneg %p1166_p8 }
  0x11   : > { %p1044_p13 = scmp.lt.s32.totalorder %s1162_s21, %s2008_s0  ;;  %p1045_p0 = scmp.lt.s32.totalorder %s1043_s29, %s1038_s26 }
  0x12   : > { %p1041_p11 = pnand %p1040_p10, %p1039_p9 }
  0x13   : > { %p1046_p1 = por %p1045_p0, %p1044_p13 }
  0x14   : > { %p1042_p12 = pneg %p1041_p11 }
  0x16   : > { %p1047_p2 = pnand %p1046_p1, %p1042_p12 }
  0x18   : > { %1050 = shalt.err (!%p1047_p2)
}
  0x19   : > { %s1051_s3 = scalar_lea.vmem %s1164_s23, 4096  ;;  %s1102_s4 = smov [#allocation3]  }
  0x1a   : > { %p1052_p3 = scmp.ne.s32.totalorder %s1164_s23, %s1051_s3  ;;  %s1056_s5 = sshll.u32 %s1102_s4, 4  ;;  %s1057_s5 = int_to_ptr.vmem [resolvable:$false] %s1056_s5 }
  0x1b   : > { %s1058_s6 = scalar_lea.vmem %s1057_s5, 8192  ;;  %p1059_p6 = scmp.lt.s32.totalorder %s1164_s23, %s1057_s5 }
  0x1c   : > { %p1054_p4 = pnand %p1052_p3, %p1040_p10  ;;  %p1060_p9 = scmp.lt.s32.totalorder %s1058_s6, %s1051_s3 }
  0x1e   : > { %p1055_p5 = pneg %p1054_p4  ;;  %p1061_p11 = por %p1060_p9, %p1059_p6 }
  0x20   : > { %p1062_p7 = pnand %p1061_p11, %p1055_p5 }
  0x22   : > { %1065 = shalt.err (!%p1062_p7)
}
  0x23   : > { %s1103_s12 = smov 2048   ;;  %s1104_s13 = smov 1024  }
  0x24   : > { %s1105_s16 = smov 64   ;;  %p924_p10 = scmp.ge.s32.totalorder %s1100_s9, 1 }
  0x25   : > { %936 = dma.hbm_to_vmem [thread:$0]  (!%p1166_p8), %s1162_s21, 4096, %s1164_s23, %s1170_s25, %s1103_s12, %s1104_s13, %s1105_s16  }
  0x26   : > { %p98_p12 = scmp.lt.s32.totalorder %s1100_s9, 3 }
  0x28   : > { %p99_p13 = pnand %p924_p10, %p98_p12 }
  0x2a   : > { %102 = sbr.rel (%p99_p13) target bundleno = 359 (0x167), region = 24 }
  0x2f   : > { %s104_s17 = sand.u32 1, %s1092_s7   ;;  %p2018_p7 = scmp.ne.s32.totalorder %s2016_s15, 0 }
  0x30   : > { %s925_s18 = sshll.u32 %s104_s17, 8  ;;  %s105_s19 = scalar_lea.sflag [#allocation4], %s104_s17 }
  0x31   : > { %s1194_s20 = scalar_lea.vmem [#allocation3], %s925_s18 }
  0x32   : > { %1083 = dma.done.wait (%p2018_p7), %s105_s19, 4096  }
  0x33   : > { %1085 = vsyncadd (%p2018_p7), %s105_s19, 4294963200  ;;  %p926_p0 = scmp.ne.s32.totalorder %s1136_s10, 0 }
  0x35   : > { %126 = sbr.rel (%p926_p0) target bundleno = 60 (0x3c), region = 32 }
  0x3a   : > { %vm127_vm0 = vcmask 3072   ;;  %v1106_v0 = vmov 0.0  }
  0x3b   : > { %128 = vst.msk [vmem:[#allocation2] sm:$0xf] %vm127_vm0, %v1106_v0 }
  0x3c PF: > { %v1202_v1 = vld [vmem:[%s1194_s20] sm:$0xff]  ;;  %v1205_v2 = vld [vmem:[%s1194_s20 + $0x8] sm:$0xff]  ;;  %v1208_v3 = vld [vmem:[%s1194_s20 + $0x10] sm:$0xff]  ;;  %vm257_vm1 = vcmask 1043456   ;;  %p927_p8 = scmp.ne.s32.totalorder %s1136_s10, 1 }
  0x3d   : > { %v1211_v4 = vld [vmem:[%s1194_s20 + $0x18] sm:$0xff]  ;;  %v1214_v5 = vld [vmem:[%s1194_s20 + $0x20] sm:$0xff]  ;;  %v1217_v6 = vld [vmem:[%s1194_s20 + $0x28] sm:$0xff]  ;;  %v258_v7 = vsel %vm257_vm1, %v1202_v1, 0.0  ;;  %v193_v11 = vcombine.high %v1202_v1, %v1202_v1  ;;  %v194_v12 = vcombine.high %v1205_v2, %v1205_v2  ;;  %v195_v13 = vcombine.high %v1208_v3, %v1208_v3 }
  0x3e   : > { %v1222_v8 = vld [vmem:[%s1194_s20 + $0x30] sm:$0xff]  ;;  %v1225_v9 = vld [vmem:[%s1194_s20 + $0x38] sm:$0xff]  ;;  %v1228_v10 = vld [vmem:[%s1194_s20 + $0x40] sm:$0xff]  ;;  %v196_v17 = vcombine.high %v1211_v4, %v1211_v4  ;;  %v197_v18 = vcombine.high %v1214_v5, %v1214_v5  ;;  %v198_v19 = vcombine.high %v1217_v6, %v1217_v6  ;;  %v272_v27 = vsel %vm257_vm1, %v1205_v2, 0.0 }
  0x3f   : > { %v1237_v14 = vld [vmem:[%s1194_s20 + $0x48] sm:$0xff]  ;;  %v1240_v15 = vld [vmem:[%s1194_s20 + $0x50] sm:$0xff]  ;;  %v1243_v16 = vld [vmem:[%s1194_s20 + $0x58] sm:$0xff]  ;;  %v259_v20 = vsel %vm257_vm1, %v1228_v10, 0.0  ;;  %v201_v25 = vcombine.high %v1228_v10, %v1228_v10  ;;  %v265_v48 = vsel %vm257_vm1, %v193_v11, 0.0 }
  0x40   : > { %v1254_v21 = vld [vmem:[%s1194_s20 + $0x60] sm:$0xff]  ;;  %v1257_v22 = vld [vmem:[%s1194_s20 + $0x68] sm:$0xff]  ;;  %v1260_v23 = vld [vmem:[%s1194_s20 + $0x70] sm:$0xff]  ;;  %v260_v26 = vadd.f32 %v259_v20, %v258_v7  ;;  %v202_v32 = vcombine.high %v1237_v14, %v1237_v14  ;;  %v203_v33 = vcombine.high %v1240_v15, %v1240_v15  ;;  %v204_v34 = vcombine.high %v1243_v16, %v1243_v16 }
  0x41   : > { %v1269_v28 = vld [vmem:[%s1194_s20 + $0x78] sm:$0xff]  ;;  %v1272_v29 = vld [vmem:[%s1194_s20 + $0x80] sm:$0xff]  ;;  %v1275_v30 = vld [vmem:[%s1194_s20 + $0x88] sm:$0xff]  ;;  %v205_v38 = vcombine.high %v1254_v21, %v1254_v21  ;;  %v266_v55 = vsel %vm257_vm1, %v201_v25, 0.0  ;;  %v273_v40 = vsel %vm257_vm1, %v1237_v14, 0.0 }
  0x42   : > { %v1286_v35 = vld [vmem:[%s1194_s20 + $0x90] sm:$0xff]  ;;  %v1289_v36 = vld [vmem:[%s1194_s20 + $0x98] sm:$0xff]  ;;  %v1292_v37 = vld [vmem:[%s1194_s20 + $0xa0] sm:$0xff]  ;;  %v261_v41 = vsel %vm257_vm1, %v1272_v29, 0.0  ;;  %v209_v46 = vcombine.high %v1272_v29, %v1272_v29  ;;  %v210_v47 = vcombine.high %v1275_v30, %v1275_v30  ;;  %v275_v24 = vsel %vm257_vm1, %v1275_v30, 0.0 }
  0x43   : > { %v1303_v42 = vld [vmem:[%s1194_s20 + $0xa8] sm:$0xff]  ;;  %v1306_v43 = vld [vmem:[%s1194_s20 + $0xb0] sm:$0xff]  ;;  %v1309_v44 = vld [vmem:[%s1194_s20 + $0xb8] sm:$0xff]  ;;  %v211_v52 = vcombine.high %v1286_v35, %v1286_v35  ;;  %v212_v53 = vcombine.high %v1289_v36, %v1289_v36  ;;  %v262_v54 = vadd.f32 %v261_v41, %v260_v26  ;;  %v213_v59 = vcombine.high %v1292_v37, %v1292_v37 }
  0x44   : > { %v1319_v49 = vld [vmem:[%s1194_s20 + $0xc0] sm:$0xff]  ;;  %v1322_v50 = vld [vmem:[%s1194_s20 + $0xc8] sm:$0xff]  ;;  %v1325_v51 = vld [vmem:[%s1194_s20 + $0xd0] sm:$0xff]  ;;  %v267_v26 = vadd.f32 %v266_v55, %v265_v48  ;;  %v268_v41 = vsel %vm257_vm1, %v209_v46, 0.0  ;;  %v274_v39 = vadd.f32 %v273_v40, %v272_v27  ;;  %v279_v46 = vsel %vm257_vm1, %v194_v12, 0.0 }
  0x45   : > { %v1333_v56 = vld [vmem:[%s1194_s20 + $0xd8] sm:$0xff]  ;;  %v1336_v57 = vld [vmem:[%s1194_s20 + $0xe0] sm:$0xff]  ;;  %v1339_v58 = vld [vmem:[%s1194_s20 + $0xe8] sm:$0xff]  ;;  %v263_v62 = vsel %vm257_vm1, %v1319_v49, 0.0  ;;  %v217_v0 = vcombine.high %v1319_v49, %v1319_v49  ;;  %v218_v7 = vcombine.high %v1322_v50, %v1322_v50  ;;  %v219_v11 = vcombine.high %v1325_v51, %v1325_v51 }
  0x46   : > { %2019 = vst [vmem:[#allocation6_spill] sm:$0xff] %v1333_v56  ;;  %2020 = vst [vmem:[#allocation7_spill] sm:$0xff] %v1336_v57  ;;  %v220_v20 = vcombine.high %v1333_v56, %v1333_v56  ;;  %v1363_v45 = vld [vmem:[%s1194_s20 + $0xf0] sm:$0xff]  ;;  %v1366_v63 = vld [vmem:[%s1194_s20 + $0xf8] sm:$0xff]  ;;  %v1370_v61 = vadd.f32 %v263_v62, %v262_v54  ;;  %v269_v60 = vadd.f32 %v268_v41, %v267_v26  ;;  %v280_v48 = vsel %vm257_vm1, %v202_v32, 0.0 }
  0x47   : > { %2021 = vst [vmem:[#allocation8_spill] sm:$0xff] %v1339_v58  ;;  %2022 = vst [vmem:[#allocation9_spill] sm:$0xff] %v1363_v45  ;;  %v270_v55 = vsel %vm257_vm1, %v217_v0, 0.0  ;;  %v281_v31 = vadd.f32 %v280_v48, %v279_v46  ;;  %v282_v54 = vsel %vm257_vm1, %v210_v47, 0.0  ;;  %v286_v62 = vsel %vm257_vm1, %v1208_v3, 0.0 }
  0x48   : > { %2023 = vst [vmem:[#allocation10_spill] sm:$0xff] %v1366_v63  ;;  %v277_v40 = vsel %vm257_vm1, %v1322_v50, 0.0  ;;  %v287_v12 = vsel %vm257_vm1, %v1240_v15, 0.0  ;;  %v276_v32 = vadd.f32 %v275_v24, %v274_v39  ;;  %v289_v47 = vsel %vm257_vm1, %v1286_v35, 0.0 }
  0x49   : > { %v288_v0 = vadd.f32 %v287_v12, %v286_v62  ;;  %v293_v26 = vsel %vm257_vm1, %v195_v13, 0.0  ;;  %v1399_v41 = vadd.f32 %v270_v55, %v269_v60  ;;  %v283_v46 = vadd.f32 %v282_v54, %v281_v31 }
  0x4a   : > { %v284_v48 = vsel %vm257_vm1, %v218_v7, 0.0  ;;  %v294_v27 = vsel %vm257_vm1, %v203_v33, 0.0  ;;  %v291_v24 = vsel %vm257_vm1, %v1325_v51, 0.0  ;;  %v296_v62 = vsel %vm257_vm1, %v211_v52, 0.0 }
  0x4b   : > { %v295_v39 = vadd.f32 %v294_v27, %v293_v26  ;;  %v300_v12 = vsel %vm257_vm1, %v1211_v4, 0.0  ;;  %v290_v13 = vadd.f32 %v289_v47, %v288_v0  ;;  %v301_v31 = vsel %vm257_vm1, %v1243_v16, 0.0 }
  0x4c   : > { %v303_v60 = vsel %vm257_vm1, %v1289_v36, 0.0  ;;  %v307_v33 = vsel %vm257_vm1, %v196_v17, 0.0  ;;  %v1419_v7 = vadd.f32 %v277_v40, %v276_v32  ;;  %v298_v55 = vsel %vm257_vm1, %v219_v11, 0.0 }
  0x4d   : > { %v302_v52 = vadd.f32 %v301_v31, %v300_v12  ;;  %v308_v54 = vsel %vm257_vm1, %v204_v34, 0.0  ;;  %v297_v27 = vadd.f32 %v296_v62, %v295_v39  ;;  %v310_v47 = vsel %vm257_vm1, %v212_v53, 0.0 }
  0x4e   : > { %v309_v0 = vadd.f32 %v308_v54, %v307_v33  ;;  %v314_v26 = vsel %vm257_vm1, %v1214_v5, 0.0  ;;  %v1429_v25 = vadd.f32 %v284_v48, %v283_v46  ;;  %v305_v40 = vsel %vm257_vm1, %v1333_v56, 0.0 }
  0x4f   : > { %v304_v17 = vadd.f32 %v303_v60, %v302_v52  ;;  %v315_v11 = vsel %vm257_vm1, %v1254_v21, 0.0  ;;  %v292_v32 = vadd.f32 %v291_v24, %v290_v13  ;;  %v317_v34 = vsel %vm257_vm1, %v1292_v37, 0.0 }
  0x50   : > { %v316_v12 = vadd.f32 %v315_v11, %v314_v26  ;;  %v321_v53 = vsel %vm257_vm1, %v197_v18, 0.0  ;;  %v311_v39 = vadd.f32 %v310_v47, %v309_v0  ;;  %v312_v46 = vsel %vm257_vm1, %v220_v20, 0.0 }
  0x51   : > { %v322_v48 = vsel %vm257_vm1, %v205_v38, 0.0  ;;  %v324_v24 = vsel %vm257_vm1, %v213_v59, 0.0  ;;  %v299_v62 = vadd.f32 %v298_v55, %v297_v27  ;;  %v319_v13 = vsel %vm257_vm1, %v1336_v57, 0.0 }
  0x52   : > { %v323_v31 = vadd.f32 %v322_v48, %v321_v53  ;;  %v328_v18 = vsel %vm257_vm1, %v1217_v6, 0.0  ;;  %v306_v60 = vadd.f32 %v305_v40, %v304_v17  ;;  %v318_v20 = vadd.f32 %v317_v34, %v316_v12 }
  0x53   : > { %v329_v33 = vsel %vm257_vm1, %v1257_v22, 0.0  ;;  %v335_v38 = vsel %vm257_vm1, %v198_v19, 0.0  ;;  %v2024_v59 = vcombine.high %v1336_v57, %v1336_v57  ;;  %v2025_v27 = vcombine.high %v1257_v22, %v1257_v22 }
  0x54   : > { %v325_v52 = vadd.f32 %v324_v24, %v323_v31  ;;  %v330_v54 = vadd.f32 %v329_v33, %v328_v18  ;;  %v313_v47 = vadd.f32 %v312_v46, %v311_v39  ;;  %v331_v26 = vsel %vm257_vm1, %v1303_v42, 0.0 }
  0x55   : > { %v326_v55 = vsel %vm257_vm1, %v2024_v59, 0.0  ;;  %v336_v0 = vsel %vm257_vm1, %v2025_v27, 0.0  ;;  %v342_v19 = vsel %vm257_vm1, %v1222_v8, 0.0  ;;  %v333_v40 = vsel %vm257_vm1, %v1339_v58, 0.0 }
  0x56   : > { %v337_v17 = vadd.f32 %v336_v0, %v335_v38  ;;  %v2026_v11 = vcombine.high %v1303_v42, %v1303_v42  ;;  %v343_v34 = vsel %vm257_vm1, %v1260_v23, 0.0  ;;  %v345_v53 = vsel %vm257_vm1, %v1306_v43, 0.0 }
  0x57   : > { %v320_v39 = vadd.f32 %v319_v13, %v318_v20  ;;  %v2027_v46 = vcombine.high %v1339_v58, %v1339_v58  ;;  %v344_v24 = vadd.f32 %v343_v34, %v342_v19  ;;  %v2028_v31 = vcombine.high %v1222_v8, %v1222_v8 }
  0x58   : > { %v338_v12 = vsel %vm257_vm1, %v2026_v11, 0.0  ;;  %v327_v33 = vadd.f32 %v326_v55, %v325_v52  ;;  %v332_v38 = vadd.f32 %v331_v26, %v330_v54  ;;  %v2029_v59 = vcombine.high %v1260_v23, %v1260_v23 }
  0x59   : > { %v340_v48 = vsel %vm257_vm1, %v2027_v46, 0.0  ;;  %v349_v18 = vsel %vm257_vm1, %v2028_v31, 0.0  ;;  %v2030_v13 = vcombine.high %v1306_v43, %v1306_v43  ;;  %v339_v0 = vadd.f32 %v338_v12, %v337_v17 }
  0x5a   : > { %v350_v27 = vsel %vm257_vm1, %v2029_v59, 0.0  ;;  %v346_v11 = vadd.f32 %v345_v53, %v344_v24  ;;  %v356_v34 = vsel %vm257_vm1, %v1225_v9, 0.0  ;;  %v347_v52 = vsel %vm257_vm1, %v1363_v45, 0.0 }
  0x5b   : > { %v352_v20 = vsel %vm257_vm1, %v2030_v13, 0.0  ;;  %v351_v19 = vadd.f32 %v350_v27, %v349_v18  ;;  %v357_v55 = vsel %vm257_vm1, %v1269_v28, 0.0  ;;  %v359_v54 = vsel %vm257_vm1, %v1309_v44, 0.0 }
  0x5c   : > { %v2031_v26 = vcombine.high %v1225_v9, %v1225_v9  ;;  %v2032_v12 = vcombine.high %v1363_v45, %v1363_v45  ;;  %v358_v24 = vadd.f32 %v357_v55, %v356_v34  ;;  %v2033_v31 = vcombine.high %v1269_v28, %v1269_v28 }
  0x5d   : > { %v353_v17 = vadd.f32 %v352_v20, %v351_v19  ;;  %v334_v59 = vadd.f32 %v333_v40, %v332_v38  ;;  %v361_v27 = vsel %vm257_vm1, %v1366_v63, 0.0  ;;  %v341_v19 = vadd.f32 %v340_v48, %v339_v0 }
  0x5e   : > { %v363_v46 = vsel %vm257_vm1, %v2031_v26, 0.0  ;;  %v354_v53 = vsel %vm257_vm1, %v2032_v12, 0.0  ;;  %v364_v18 = vsel %vm257_vm1, %v2033_v31, 0.0  ;;  %v2034_v26 = vcombine.high %v1309_v44, %v1309_v44 }
  0x5f   : > { %v365_v13 = vadd.f32 %v364_v18, %v363_v46  ;;  %v348_v45 = vadd.f32 %v347_v52, %v346_v11  ;;  %v360_v58 = vadd.f32 %v359_v54, %v358_v24  ;;  %v2035_v34 = vcombine.high %v1366_v63, %v1366_v63 }
  0x60   : > { %v366_v20 = vsel %vm257_vm1, %v2034_v26, 0.0  ;;  %v355_v12 = vadd.f32 %v354_v53, %v353_v17  ;;  %v371_v40 = vmul.f32 0.25, %v1370_v61  ;;  %v372_v38 = vmul.f32 0.25, %v1399_v41 }
  0x61   : > { %v368_v55 = vsel %vm257_vm1, %v2035_v34, 0.0  ;;  %v367_v31 = vadd.f32 %v366_v20, %v365_v13  ;;  %v362_v46 = vadd.f32 %v361_v27, %v360_v58  ;;  %v373_v18 = vmul.f32 0.25, %v1419_v7 }
  0x62   : > { %v374_v57 = vmul.f32 0.25, %v1429_v25  ;;  %v375_v26 = vmul.f32 0.25, %v292_v32  ;;  %v376_v0 = vmul.f32 0.25, %v299_v62  ;;  %v377_v11 = vmul.f32 0.25, %v306_v60 }
  0x63   : > { %v369_v48 = vadd.f32 %v368_v55, %v367_v31  ;;  %v378_v52 = vmul.f32 0.25, %v313_v47  ;;  %v379_v54 = vmul.f32 0.25, %v320_v39  ;;  %v380_v24 = vmul.f32 0.25, %v327_v33  ;;  %v2036_v55 = vld [vmem:[#allocation6_spill] sm:$0xff]  ;;  %v2038_v31 = vld [vmem:[#allocation8_spill] sm:$0xff] }
  0x64   : > { %v381_v63 = vmul.f32 0.25, %v334_v59  ;;  %v382_v34 = vmul.f32 0.25, %v341_v19  ;;  %v383_v17 = vmul.f32 0.25, %v348_v45  ;;  %v384_v53 = vmul.f32 0.25, %v355_v12  ;;  %v2037_v12 = vld [vmem:[#allocation7_spill] sm:$0xff] }
  0x65   : > { %v385_v13 = vmul.f32 0.25, %v362_v46  ;;  %v386_v61 = vmul.f32 0.25, %v369_v48  ;;  %v403_v20 = vcombine.low %v371_v40, %v372_v38  ;;  %v404_v41 = vcombine.low %v373_v18, %v374_v57  ;;  %v2039_v40 = vld [vmem:[#allocation9_spill] sm:$0xff]  ;;  %v2040_v38 = vld [vmem:[#allocation10_spill] sm:$0xff] }
  0x66   : > { %v405_v58 = vcombine.low %v375_v26, %v376_v0  ;;  %v406_v27 = vcombine.low %v377_v11, %v378_v52  ;;  %v407_v7 = vcombine.low %v379_v54, %v380_v24  ;;  %v408_v56 = vcombine.low %v381_v63, %v382_v34 }
  0x67   : > { %v409_v25 = vcombine.low %v383_v17, %v384_v53  ;;  %v410_v32 = vcombine.low %v385_v13, %v386_v61  ;;  %v419_v62 = vsub.f32 %v1202_v1, %v403_v20  ;;  %v420_v60 = vsub.f32 %v1205_v2, %v404_v41 }
  0x68   : > { %v421_v47 = vsub.f32 %v1208_v3, %v405_v58  ;;  %v422_v39 = vsub.f32 %v1211_v4, %v406_v27  ;;  %v423_v45 = vsub.f32 %v1214_v5, %v407_v7  ;;  %v424_v33 = vsub.f32 %v1217_v6, %v408_v56 }
  0x69   : > { %v425_v57 = vsub.f32 %v1222_v8, %v409_v25  ;;  %v426_v59 = vsub.f32 %v1225_v9, %v410_v32  ;;  %v427_v63 = vsub.f32 %v1228_v10, %v403_v20  ;;  %v428_v19 = vsub.f32 %v1237_v14, %v404_v41 }
  0x6a   : > { %v429_v1 = vsub.f32 %v1240_v15, %v405_v58  ;;  %v430_v2 = vsub.f32 %v1243_v16, %v406_v27  ;;  %v431_v3 = vsub.f32 %v1254_v21, %v407_v7  ;;  %v432_v4 = vsub.f32 %v1257_v22, %v408_v56 }
  0x6b   : > { %v433_v5 = vsub.f32 %v1260_v23, %v409_v25  ;;  %v434_v6 = vsub.f32 %v1269_v28, %v410_v32  ;;  %v435_v8 = vsub.f32 %v1272_v29, %v403_v20  ;;  %v436_v9 = vsub.f32 %v1275_v30, %v404_v41 }
  0x6c   : > { %v437_v10 = vsub.f32 %v1286_v35, %v405_v58  ;;  %v438_v14 = vsub.f32 %v1289_v36, %v406_v27  ;;  %v439_v15 = vsub.f32 %v1292_v37, %v407_v7  ;;  %v440_v16 = vsub.f32 %v1303_v42, %v408_v56 }
  0x6d   : > { %v441_v21 = vsub.f32 %v1306_v43, %v409_v25  ;;  %v442_v22 = vsub.f32 %v1309_v44, %v410_v32  ;;  %v443_v23 = vsub.f32 %v1319_v49, %v403_v20  ;;  %v444_v28 = vsub.f32 %v1322_v50, %v404_v41 }
  0x6e   : > { %v445_v29 = vsub.f32 %v1325_v51, %v405_v58  ;;  %v446_v30 = vsub.f32 %v2036_v55, %v406_v27  ;;  %v447_v35 = vsub.f32 %v2037_v12, %v407_v7  ;;  %v448_v36 = vsub.f32 %v2038_v31, %v408_v56 }
  0x6f   : > { %v449_v37 = vsub.f32 %v2039_v40, %v409_v25  ;;  %v450_v42 = vsub.f32 %v2040_v38, %v410_v32  ;;  %v451_v46 = vmul.f32 %v419_v62, %v419_v62  ;;  %v1564_v43 = vmul.f32 %v420_v60, %v420_v60 }
  0x70   : > { %v1566_v44 = vmul.f32 %v421_v47, %v421_v47  ;;  %v1568_v49 = vmul.f32 %v422_v39, %v422_v39  ;;  %v1570_v50 = vmul.f32 %v423_v45, %v423_v45  ;;  %v1572_v51 = vmul.f32 %v424_v33, %v424_v33 }
  0x71   : > { %v1574_v18 = vmul.f32 %v425_v57, %v425_v57  ;;  %v1576_v26 = vmul.f32 %v426_v59, %v426_v59  ;;  %v459_v56 = vmul.f32 %v427_v63, %v427_v63  ;;  %v1578_v48 = vmul.f32 %v428_v19, %v428_v19 }
  0x72   : > { %v1580_v0 = vmul.f32 %v429_v1, %v429_v1  ;;  %v1582_v11 = vmul.f32 %v430_v2, %v430_v2  ;;  %v1584_v52 = vmul.f32 %v431_v3, %v431_v3  ;;  %v1586_v54 = vmul.f32 %v432_v4, %v432_v4 }
  0x73   : > { %v1588_v24 = vmul.f32 %v433_v5, %v433_v5  ;;  %v1590_v34 = vmul.f32 %v434_v6, %v434_v6  ;;  %v467_v17 = vmul.f32 %v435_v8, %v435_v8  ;;  %v1592_v53 = vmul.f32 %v436_v9, %v436_v9 }
  0x74   : > { %v1594_v13 = vmul.f32 %v437_v10, %v437_v10  ;;  %v1596_v61 = vmul.f32 %v438_v14, %v438_v14  ;;  %v1598_v20 = vmul.f32 %v439_v15, %v439_v15  ;;  %v1600_v41 = vmul.f32 %v440_v16, %v440_v16 }
  0x75   : > { %v1602_v58 = vmul.f32 %v441_v21, %v441_v21  ;;  %v1604_v27 = vmul.f32 %v442_v22, %v442_v22  ;;  %v475_v7 = vmul.f32 %v443_v23, %v443_v23  ;;  %v1606_v25 = vmul.f32 %v444_v28, %v444_v28 }
  0x76   : > { %v1608_v32 = vmul.f32 %v445_v29, %v445_v29  ;;  %v1610_v62 = vmul.f32 %v446_v30, %v446_v30  ;;  %v1612_v60 = vmul.f32 %v447_v35, %v447_v35  ;;  %v1614_v47 = vmul.f32 %v448_v36, %v448_v36 }
  0x77   : > { %v1616_v39 = vmul.f32 %v449_v37, %v449_v37  ;;  %v1618_v45 = vmul.f32 %v450_v42, %v450_v42  ;;  %v515_v33 = vcombine.high %v451_v46, %v451_v46  ;;  %v516_v57 = vcombine.high %v1564_v43, %v1564_v43 }
  0x78   : > { %v517_v59 = vcombine.high %v1566_v44, %v1566_v44  ;;  %v518_v63 = vcombine.high %v1568_v49, %v1568_v49  ;;  %v523_v19 = vcombine.high %v459_v56, %v459_v56  ;;  %v519_v1 = vcombine.high %v1570_v50, %v1570_v50 }
  0x79   : > { %v520_v2 = vcombine.high %v1572_v51, %v1572_v51  ;;  %v521_v3 = vcombine.high %v1574_v18, %v1574_v18  ;;  %v524_v5 = vcombine.high %v1578_v48, %v1578_v48  ;;  %v525_v6 = vcombine.high %v1580_v0, %v1580_v0 }
  0x7a   : > { %v526_v8 = vcombine.high %v1582_v11, %v1582_v11  ;;  %v527_v9 = vcombine.high %v1584_v52, %v1584_v52  ;;  %v528_v10 = vcombine.high %v1586_v54, %v1586_v54  ;;  %v529_v14 = vcombine.high %v1588_v24, %v1588_v24 }
  0x7b   : > { %v579_v15 = vsel %vm257_vm1, %v451_v46, 0.0  ;;  %v580_v16 = vsel %vm257_vm1, %v459_v56, 0.0  ;;  %v531_v22 = vcombine.high %v467_v17, %v467_v17  ;;  %v586_v23 = vsel %vm257_vm1, %v515_v33, 0.0 }
  0x7c   : > { %v587_v28 = vsel %vm257_vm1, %v523_v19, 0.0  ;;  %v532_v29 = vcombine.high %v1592_v53, %v1592_v53  ;;  %v533_v55 = vcombine.high %v1594_v13, %v1594_v13  ;;  %v534_v30 = vcombine.high %v1596_v61, %v1596_v61 }
  0x7d   : > { %v535_v12 = vcombine.high %v1598_v20, %v1598_v20  ;;  %v539_v36 = vcombine.high %v475_v7, %v475_v7  ;;  %v581_v40 = vadd.f32 %v580_v16, %v579_v15  ;;  %v540_v38 = vcombine.high %v1606_v25, %v1606_v25 }
  0x7e   : > { %v582_v42 = vsel %vm257_vm1, %v467_v17, 0.0  ;;  %v588_v46 = vadd.f32 %v587_v28, %v586_v23  ;;  %v541_v56 = vcombine.high %v1608_v32, %v1608_v32  ;;  %v589_v33 = vsel %vm257_vm1, %v531_v22, 0.0 }
  0x7f   : > { %v593_v19 = vsel %vm257_vm1, %v1564_v43, 0.0  ;;  %v594_v15 = vsel %vm257_vm1, %v1578_v48, 0.0  ;;  %v542_v16 = vcombine.high %v1610_v62, %v1610_v62  ;;  %v543_v37 = vcombine.high %v1612_v60, %v1612_v60 }
  0x80   : > { %v583_v28 = vadd.f32 %v582_v42, %v581_v40  ;;  %v584_v43 = vsel %vm257_vm1, %v475_v7, 0.0  ;;  %v591_v48 = vsel %vm257_vm1, %v539_v36, 0.0  ;;  %v590_v31 = vadd.f32 %v589_v33, %v588_v46 }
  0x81   : > { %v595_v21 = vadd.f32 %v594_v15, %v593_v19  ;;  %v596_v4 = vsel %vm257_vm1, %v1592_v53, 0.0  ;;  %v598_v35 = vsel %vm257_vm1, %v1606_v25, 0.0  ;;  %v600_v17 = vsel %vm257_vm1, %v516_v57, 0.0 }
  0x82   : > { %v601_v23 = vsel %vm257_vm1, %v524_v5, 0.0  ;;  %v607_v22 = vsel %vm257_vm1, %v1566_v44, 0.0  ;;  %v608_v7 = vsel %vm257_vm1, %v1580_v0, 0.0  ;;  %v614_v36 = vsel %vm257_vm1, %v517_v59, 0.0 }
  0x83   : > { %v615_v40 = vsel %vm257_vm1, %v525_v6, 0.0  ;;  %v621_v53 = vsel %vm257_vm1, %v1568_v49, 0.0  ;;  %v622_v25 = vsel %vm257_vm1, %v1582_v11, 0.0  ;;  %v1704_v42 = vadd.f32 %v584_v43, %v583_v28 }
  0x84   : > { %v603_v57 = vsel %vm257_vm1, %v532_v29, 0.0  ;;  %v628_v5 = vsel %vm257_vm1, %v518_v63, 0.0  ;;  %v629_v44 = vsel %vm257_vm1, %v526_v8, 0.0  ;;  %v597_v46 = vadd.f32 %v596_v4, %v595_v21 }
  0x85   : > { %v602_v0 = vadd.f32 %v601_v23, %v600_v17  ;;  %v605_v59 = vsel %vm257_vm1, %v540_v38, 0.0  ;;  %v635_v6 = vsel %vm257_vm1, %v1570_v50, 0.0  ;;  %v609_v33 = vadd.f32 %v608_v7, %v607_v22 }
  0x86   : > { %v616_v49 = vadd.f32 %v615_v40, %v614_v36  ;;  %v623_v19 = vadd.f32 %v622_v25, %v621_v53  ;;  %v636_v11 = vsel %vm257_vm1, %v1584_v52, 0.0  ;;  %v610_v29 = vsel %vm257_vm1, %v1594_v13, 0.0 }
  0x87   : > { %v617_v63 = vsel %vm257_vm1, %v533_v55, 0.0  ;;  %v624_v4 = vsel %vm257_vm1, %v1596_v61, 0.0  ;;  %v630_v8 = vadd.f32 %v629_v44, %v628_v5  ;;  %v631_v21 = vsel %vm257_vm1, %v534_v30, 0.0 }
  0x88   : > { %v637_v38 = vadd.f32 %v636_v11, %v635_v6  ;;  %v642_v15 = vsel %vm257_vm1, %v519_v1, 0.0  ;;  %v643_v17 = vsel %vm257_vm1, %v527_v9, 0.0  ;;  %v592_v13 = vadd.f32 %v591_v48, %v590_v31 }
  0x89   : > { %v604_v23 = vadd.f32 %v603_v57, %v602_v0  ;;  %v612_v55 = vsel %vm257_vm1, %v1608_v32, 0.0  ;;  %v638_v61 = vsel %vm257_vm1, %v1598_v20, 0.0  ;;  %v611_v30 = vadd.f32 %v610_v29, %v609_v33 }
  0x8a   : > { %v618_v22 = vadd.f32 %v617_v63, %v616_v49  ;;  %v619_v28 = vsel %vm257_vm1, %v541_v56, 0.0  ;;  %v625_v50 = vadd.f32 %v624_v4, %v623_v19  ;;  %v626_v1 = vsel %vm257_vm1, %v1610_v62, 0.0 }
  0x8b   : > { %v632_v43 = vadd.f32 %v631_v21, %v630_v8  ;;  %v633_v52 = vsel %vm257_vm1, %v542_v16, 0.0  ;;  %v644_v9 = vadd.f32 %v643_v17, %v642_v15  ;;  %v639_v31 = vadd.f32 %v638_v61, %v637_v38 }
  0x8c   : > { %v645_v32 = vsel %vm257_vm1, %v535_v12, 0.0  ;;  %v649_v48 = vsel %vm257_vm1, %v1572_v51, 0.0  ;;  %v650_v56 = vsel %vm257_vm1, %v1586_v54, 0.0  ;;  %v599_v7 = vadd.f32 %v598_v35, %v597_v46 }
  0x8d   : > { %v640_v62 = vsel %vm257_vm1, %v1612_v60, 0.0  ;;  %v656_v16 = vsel %vm257_vm1, %v520_v2, 0.0  ;;  %v657_v20 = vsel %vm257_vm1, %v528_v10, 0.0  ;;  %v606_v12 = vadd.f32 %v605_v59, %v604_v23 }
  0x8e   : > { %v613_v36 = vadd.f32 %v612_v55, %v611_v30  ;;  %v620_v40 = vadd.f32 %v619_v28, %v618_v22  ;;  %v627_v53 = vadd.f32 %v626_v1, %v625_v50  ;;  %v634_v25 = vadd.f32 %v633_v52, %v632_v43 }
  0x8f   : > { %v646_v57 = vadd.f32 %v645_v32, %v644_v9  ;;  %v647_v35 = vsel %vm257_vm1, %v543_v37, 0.0  ;;  %v651_v5 = vadd.f32 %v650_v56, %v649_v48  ;;  %v641_v51 = vadd.f32 %v640_v62, %v639_v31 }
  0x90   : > { %v652_v2 = vsel %vm257_vm1, %v1600_v41, 0.0  ;;  %v654_v54 = vsel %vm257_vm1, %v1614_v47, 0.0  ;;  %v658_v10 = vadd.f32 %v657_v20, %v656_v16  ;;  %v663_v44 = vsel %vm257_vm1, %v1574_v18, 0.0 }
  0x91   : > { %v664_v46 = vsel %vm257_vm1, %v1588_v24, 0.0  ;;  %v670_v60 = vsel %vm257_vm1, %v521_v3, 0.0  ;;  %v671_v37 = vsel %vm257_vm1, %v529_v14, 0.0  ;;  %v2041_v0 = vcombine.high %v1600_v41, %v1600_v41 }
  0x92   : > { %v2042_v6 = vcombine.high %v1614_v47, %v1614_v47  ;;  %v677_v18 = vsel %vm257_vm1, %v1576_v26, 0.0  ;;  %v678_v3 = vsel %vm257_vm1, %v1590_v34, 0.0  ;;  %v648_v49 = vadd.f32 %v647_v35, %v646_v57 }
  0x93   : > { %v659_v59 = vsel %vm257_vm1, %v2041_v0, 0.0  ;;  %v653_v24 = vadd.f32 %v652_v2, %v651_v5  ;;  %v2043_v14 = vcombine.high %v1576_v26, %v1576_v26  ;;  %v2044_v19 = vcombine.high %v1590_v34, %v1590_v34 }
  0x94   : > { %v661_v33 = vsel %vm257_vm1, %v2042_v6, 0.0  ;;  %v665_v11 = vadd.f32 %v664_v46, %v663_v44  ;;  %v666_v29 = vsel %vm257_vm1, %v1602_v58, 0.0  ;;  %v672_v63 = vadd.f32 %v671_v37, %v670_v60 }
  0x95   : > { %v684_v41 = vsel %vm257_vm1, %v2043_v14, 0.0  ;;  %v685_v47 = vsel %vm257_vm1, %v2044_v19, 0.0  ;;  %v691_v4 = vmul.f32 0.25, %v1704_v42  ;;  %v2045_v8 = vcombine.high %v1602_v58, %v1602_v58 }
  0x96   : > { %v679_v26 = vadd.f32 %v678_v3, %v677_v18  ;;  %v692_v38 = vmul.f32 0.25, %v592_v13  ;;  %v693_v15 = vmul.f32 0.25, %v599_v7  ;;  %v660_v17 = vadd.f32 %v659_v59, %v658_v10 }
  0x97   : > { %v673_v21 = vsel %vm257_vm1, %v2045_v8, 0.0  ;;  %v680_v34 = vsel %vm257_vm1, %v1604_v27, 0.0  ;;  %v686_v23 = vadd.f32 %v685_v47, %v684_v41  ;;  %v694_v55 = vmul.f32 0.25, %v606_v12 }
  0x98   : > { %v655_v61 = vadd.f32 %v654_v54, %v653_v24  ;;  %v668_v30 = vsel %vm257_vm1, %v1616_v39, 0.0  ;;  %v2046_v42 = vcombine.high %v1616_v39, %v1616_v39  ;;  %v2047_v22 = vcombine.high %v1604_v27, %v1604_v27 }
  0x99   : > { %v667_v28 = vadd.f32 %v666_v29, %v665_v11  ;;  %v674_v50 = vadd.f32 %v673_v21, %v672_v63  ;;  %v682_v1 = vsel %vm257_vm1, %v1618_v45, 0.0  ;;  %v1815_v43 = vadd.f32 1e-08, %v691_v4 }
  0x9a   : > { %v675_v58 = vsel %vm257_vm1, %v2046_v42, 0.0  ;;  %v687_v13 = vsel %vm257_vm1, %v2047_v22, 0.0  ;;  %v681_v52 = vadd.f32 %v680_v34, %v679_v26  ;;  %v695_v9 = vmul.f32 0.25, %v613_v36 }
  0x9b   : > { %v1817_v31 = vadd.f32 1e-08, %v692_v38  ;;  %v1819_v32 = vadd.f32 1e-08, %v693_v15  ;;  %v688_v39 = vadd.f32 %v687_v13, %v686_v23  ;;  %v696_v48 = vmul.f32 0.25, %v620_v40 }
  0x9c   : > { %v1821_v56 = vadd.f32 1e-08, %v694_v55  ;;  %1006 = vrsqrt.f32 %v1815_v43  ;;  %v662_v27 = vadd.f32 %v661_v33, %v660_v17  ;;  %v2048_v7 = vcombine.high %v1618_v45, %v1618_v45 }
  0x9d   : > { %v697_v16 = vmul.f32 0.25, %v627_v53  ;;  %1008 = vrsqrt.f32 %v1817_v31  ;;  %v669_v20 = vadd.f32 %v668_v30, %v667_v28  ;;  %v676_v12 = vadd.f32 %v675_v58, %v674_v50 }
  0x9e   : > { %v689_v62 = vsel %vm257_vm1, %v2048_v7, 0.0  ;;  %v698_v36 = vmul.f32 0.25, %v634_v25  ;;  %1010 = vrsqrt.f32 %v1819_v32  ;;  %v683_v57 = vadd.f32 %v682_v1, %v681_v52 }
  0x9f   : > { %v699_v40 = vmul.f32 0.25, %v641_v51  ;;  %v1830_v35 = vadd.f32 1e-08, %v695_v9  ;;  %1012 = vrsqrt.f32 %v1821_v56  ;;  %v690_v5 = vadd.f32 %v689_v62, %v688_v39 }
  0xa0   : > { %v700_v2 = vmul.f32 0.25, %v648_v49  ;;  %v1833_v54 = vadd.f32 1e-08, %v696_v48  ;;  %v701_v45 = vmul.f32 0.25, %v655_v61  ;;  %v1835_v10 = vadd.f32 1e-08, %v697_v16 }
  0xa1   : > { %v702_v53 = vmul.f32 0.25, %v662_v27  ;;  %v703_v44 = vmul.f32 0.25, %v669_v20  ;;  %v1837_v46 = vadd.f32 1e-08, %v698_v36  ;;  %v704_v25 = vmul.f32 0.25, %v676_v12 }
  0xa2   : > { %v705_v60 = vmul.f32 0.25, %v683_v57  ;;  %v1839_v37 = vadd.f32 1e-08, %v699_v40  ;;  %1014 = vrsqrt.f32 %v1830_v35  ;;  %v706_v51 = vmul.f32 0.25, %v690_v5 }
  0xa3   : > { %v1842_v0 = vadd.f32 1e-08, %v700_v2  ;;  %1016 = vrsqrt.f32 %v1833_v54  ;;  %v1845_v59 = vadd.f32 1e-08, %v701_v45  ;;  %v1848_v6 = vadd.f32 1e-08, %v702_v53 }
  0xa4   : > { %1018 = vrsqrt.f32 %v1835_v10  ;;  %v1851_v33 = vadd.f32 1e-08, %v703_v44  ;;  %v1853_v18 = vadd.f32 1e-08, %v704_v25  ;;  %v1855_v3 = vadd.f32 1e-08, %v705_v60 }
  0xa5   : > { %1020 = vrsqrt.f32 %v1837_v46  ;;  %v1858_v49 = vadd.f32 1e-08, %v706_v51  ;;  %vm725_vm2 = vcmp.eq.f32.partialorder %v1815_v43, inf  ;;  %vm727_vm3 = vcmp.eq.f32.partialorder %v1815_v43, 0.0 }
  0xa6   : > { %1022 = vrsqrt.f32 %v1839_v37  ;;  %v728_v14 = vand.u32 2147483648, %v1815_v43  ;;  %vm732_vm4 = vcmp.eq.f32.partialorder %v1817_v31, inf  ;;  %vm734_vm5 = vcmp.eq.f32.partialorder %v1817_v31, 0.0 }
  0xa7   : > { %1024 = vrsqrt.f32 %v1842_v0  ;;  %v735_v47 = vand.u32 2147483648, %v1817_v31  ;;  %vm739_vm6 = vcmp.eq.f32.partialorder %v1819_v32, inf  ;;  %vm741_vm7 = vcmp.eq.f32.partialorder %v1819_v32, 0.0 }
  0xa8   : > { %1026 = vrsqrt.f32 %v1845_v59  ;;  %v742_v63 = vand.u32 2147483648, %v1819_v32  ;;  %vm746_vm8 = vcmp.eq.f32.partialorder %v1821_v56, inf  ;;  %vm748_vm9 = vcmp.eq.f32.partialorder %v1821_v56, 0.0 }
  0xa9   : > { %v1007_v24 = vpop.eup %1006  ;;  %1028 = vrsqrt.f32 %v1848_v6  ;;  %v749_v26 = vand.u32 2147483648, %v1821_v56  ;;  %vm753_vm10 = vcmp.eq.f32.partialorder %v1830_v35, inf  ;;  %vm755_vm11 = vcmp.eq.f32.partialorder %v1830_v35, 0.0 }
  0xaa   : > { %v1009_v41 = vpop.eup %1008  ;;  %v724_v19 = vmul.f32 %v1007_v24, %v1815_v43  ;;  %1030 = vrsqrt.f32 %v1851_v33  ;;  %v756_v34 = vand.u32 2147483648, %v1830_v35  ;;  %vm760_vm12 = vcmp.eq.f32.partialorder %v1833_v54, inf }
  0xab   : > { %v1011_v11 = vpop.eup %1010  ;;  %v731_v29 = vmul.f32 %v1009_v41, %v1817_v31  ;;  %vm762_vm13 = vcmp.eq.f32.partialorder %v1833_v54, 0.0  ;;  %1032 = vrsqrt.f32 %v1853_v18  ;;  %v763_v58 = vand.u32 2147483648, %v1833_v54 }
  0xac   : > { %v1013_v4 = vpop.eup %1012  ;;  %v726_v8 = vsel %vm725_vm2, %v1815_v43, %v724_v19  ;;  %v738_v21 = vmul.f32 %v1011_v11, %v1819_v32  ;;  %vm767_vm14 = vcmp.eq.f32.partialorder %v1835_v10, inf  ;;  %v770_v28 = vand.u32 2147483648, %v1835_v10 }
  0xad   : > { %v733_v38 = vsel %vm732_vm4, %v1817_v31, %v731_v29  ;;  %v745_v15 = vmul.f32 %v1013_v4, %v1821_v56  ;;  %v729_v23 = vsel %vm727_vm3, %v728_v14, %v726_v8  ;;  %vm774_vm15 = vcmp.eq.f32.partialorder %v1837_v46, inf }
  0xae   : > { %v740_v17 = vsel %vm739_vm6, %v1819_v32, %v738_v21  ;;  %v736_v30 = vsel %vm734_vm5, %v735_v47, %v733_v38  ;;  %1034 = vrsqrt.f32 %v1855_v3  ;;  %v836_v52 = vsel %vm257_vm1, %v729_v23, 0.0 }
  0xaf   : > { %v747_v55 = vsel %vm746_vm8, %v1821_v56, %v745_v15  ;;  %v1015_v61 = vpop.eup %1014  ;;  %v743_v42 = vsel %vm741_vm7, %v742_v63, %v740_v17  ;;  %1036 = vrsqrt.f32 %v1858_v49  ;;  %v837_v39 = vsel %vm257_vm1, %v736_v30, 0.0 }
  0xb0   : > { %v1017_v22 = vpop.eup %1016  ;;  %v752_v13 = vmul.f32 %v1015_v61, %v1830_v35  ;;  %v750_v1 = vsel %vm748_vm9, %v749_v26, %v747_v55  ;;  %v839_v48 = vsel %vm257_vm1, %v743_v42, 0.0  ;;  %v838_v16 = vadd.f32 %v837_v39, %v836_v52 }
  0xb1   : > { %v1019_v50 = vpop.eup %1018  ;;  %v759_v43 = vmul.f32 %v1017_v22, %v1833_v54  ;;  %vm769_vm0 = vcmp.eq.f32.partialorder %v1835_v10, 0.0  ;;  %v841_v57 = vsel %vm257_vm1, %v750_v1, 0.0  ;;  %v777_v5 = vand.u32 2147483648, %v1837_v46 }
  0xb2   : > { %v1021_v9 = vpop.eup %1020  ;;  %v754_v31 = vsel %vm753_vm10, %v1830_v35, %v752_v13  ;;  %v766_v32 = vmul.f32 %v1019_v50, %v1835_v10  ;;  %vm781_vm2 = vcmp.eq.f32.partialorder %v1839_v37, inf  ;;  %v840_v2 = vadd.f32 %v839_v48, %v838_v16 }
  0xb3   : > { %v1023_v27 = vpop.eup %1022  ;;  %v757_v56 = vsel %vm755_vm11, %v756_v34, %v754_v31  ;;  %v761_v7 = vsel %vm760_vm12, %v1833_v54, %v759_v43  ;;  %v773_v62 = vmul.f32 %v1021_v9, %v1837_v46  ;;  %vm776_vm3 = vcmp.eq.f32.partialorder %v1837_v46, 0.0 }
  0xb4   : > { %v1025_v20 = vpop.eup %1024  ;;  %v768_v12 = vsel %vm767_vm14, %v1835_v10, %v766_v32  ;;  %v780_v36 = vmul.f32 %v1023_v27, %v1839_v37  ;;  %v764_v35 = vsel %vm762_vm13, %v763_v58, %v761_v7  ;;  %v843_v53 = vsel %vm257_vm1, %v757_v56, 0.0 }
  0xb5   : > { %v1027_v40 = vpop.eup %1026  ;;  %v775_v45 = vsel %vm774_vm15, %v1837_v46, %v773_v62  ;;  %v787_v10 = vmul.f32 %v1025_v20, %v1842_v0  ;;  %v771_v25 = vsel %vm769_vm0, %v770_v28, %v768_v12  ;;  %v784_v54 = vand.u32 2147483648, %v1839_v37 }
  0xb6   : > { %v1029_v44 = vpop.eup %1028  ;;  %vm788_vm4 = vcmp.eq.f32.partialorder %v1842_v0, inf  ;;  %v842_v60 = vadd.f32 %v841_v57, %v840_v2  ;;  %v782_v51 = vsel %vm781_vm2, %v1839_v37, %v780_v36  ;;  %vm783_vm5 = vcmp.eq.f32.partialorder %v1839_v37, 0.0 }
  0xb7   : > { %v794_v24 = vmul.f32 %v1027_v40, %v1845_v59  ;;  %v845_v14 = vsel %vm257_vm1, %v764_v35, 0.0  ;;  %v1031_v46 = vpop.eup %1030  ;;  %v778_v41 = vsel %vm776_vm3, %v777_v5, %v775_v45  ;;  %v791_v19 = vand.u32 2147483648, %v1842_v0 }
  0xb8   : > { %vm795_vm6 = vcmp.eq.f32.partialorder %v1845_v59, inf  ;;  %v844_v47 = vadd.f32 %v843_v53, %v842_v60  ;;  %v789_v11 = vsel %vm788_vm4, %v1842_v0, %v787_v10  ;;  %vm790_vm7 = vcmp.eq.f32.partialorder %v1842_v0, 0.0  ;;  %v1033_v37 = vpop.eup %1032  ;;  %v835_v10 = vld [vmem:[#allocation2] sm:$0xf] }
  0xb9   : > { %v801_v29 = vmul.f32 %v1029_v44, %v1848_v6  ;;  %v847_v63 = vsel %vm257_vm1, %v771_v25, 0.0  ;;  %v785_v4 = vsel %vm783_vm5, %v784_v54, %v782_v51  ;;  %v798_v8 = vand.u32 2147483648, %v1845_v59 }
  0xba   : > { %vm802_vm8 = vcmp.eq.f32.partialorder %v1848_v6, inf  ;;  %v846_v21 = vadd.f32 %v845_v14, %v844_v47  ;;  %v796_v26 = vsel %vm795_vm6, %v1845_v59, %v794_v24  ;;  %vm797_vm9 = vcmp.eq.f32.partialorder %v1845_v59, 0.0 }
  0xbb   : > { %v808_v38 = vmul.f32 %v1031_v46, %v1851_v33  ;;  %v849_v15 = vsel %vm257_vm1, %v778_v41, 0.0  ;;  %v1035_v0 = vpop.eup %1034  ;;  %v792_v17 = vsel %vm790_vm7, %v791_v19, %v789_v11  ;;  %v805_v34 = vand.u32 2147483648, %v1848_v6 }
  0xbc   : > { %vm809_vm10 = vcmp.eq.f32.partialorder %v1851_v33, inf  ;;  %v848_v23 = vadd.f32 %v847_v63, %v846_v21  ;;  %v1037_v55 = vpop.eup %1036  ;;  %v803_v61 = vsel %vm802_vm8, %v1848_v6, %v801_v29  ;;  %vm804_vm11 = vcmp.eq.f32.partialorder %v1848_v6, 0.0 }
  0xbd   : > { %v815_v30 = vmul.f32 %v1033_v37, %v1853_v18  ;;  %v851_v59 = vsel %vm257_vm1, %v785_v4, 0.0  ;;  %v799_v42 = vsel %vm797_vm9, %v798_v8, %v796_v26  ;;  %v812_v58 = vand.u32 2147483648, %v1851_v33 }
  0xbe   : > { %vm816_vm12 = vcmp.eq.f32.partialorder %v1853_v18, inf  ;;  %v850_v22 = vadd.f32 %v849_v15, %v848_v23  ;;  %v810_v13 = vsel %vm809_vm10, %v1851_v33, %v808_v38  ;;  %vm811_vm13 = vcmp.eq.f32.partialorder %v1851_v33, 0.0 }
  0xbf   : > { %v822_v28 = vmul.f32 %v1035_v0, %v1855_v3  ;;  %v853_v50 = vsel %vm257_vm1, %v792_v17, 0.0  ;;  %v806_v1 = vsel %vm804_vm11, %v805_v34, %v803_v61  ;;  %v819_v6 = vand.u32 2147483648, %v1853_v18 }
  0xc0   : > { %vm823_vm14 = vcmp.eq.f32.partialorder %v1855_v3, inf  ;;  %v852_v43 = vadd.f32 %v851_v59, %v850_v22  ;;  %v817_v52 = vsel %vm816_vm12, %v1853_v18, %v815_v30  ;;  %vm818_vm15 = vcmp.eq.f32.partialorder %v1853_v18, 0.0 }
  0xc1   : > { %v829_v9 = vmul.f32 %v1037_v55, %v1858_v49  ;;  %v855_v31 = vsel %vm257_vm1, %v799_v42, 0.0  ;;  %v813_v32 = vsel %vm811_vm13, %v812_v58, %v810_v13  ;;  %v826_v33 = vand.u32 2147483648, %v1855_v3 }
  0xc2   : > { %vm830_vm0 = vcmp.eq.f32.partialorder %v1858_v49, inf  ;;  %v854_v39 = vadd.f32 %v853_v50, %v852_v43  ;;  %v824_v48 = vsel %vm823_vm14, %v1855_v3, %v822_v28  ;;  %vm825_vm2 = vcmp.eq.f32.partialorder %v1855_v3, 0.0 }
  0xc3   : > { %v857_v27 = vsel %vm257_vm1, %v806_v1, 0.0  ;;  %v820_v56 = vsel %vm818_vm15, %v819_v6, %v817_v52  ;;  %v833_v7 = vand.u32 2147483648, %v1858_v49  ;;  %v831_v62 = vsel %vm830_vm0, %v1858_v49, %v829_v9 }
  0xc4   : > { %v856_v18 = vadd.f32 %v855_v31, %v854_v39  ;;  %vm832_vm3 = vcmp.eq.f32.partialorder %v1858_v49, 0.0  ;;  %v859_v16 = vsel %vm257_vm1, %v813_v32, 0.0  ;;  %v827_v20 = vsel %vm825_vm2, %v826_v33, %v824_v48 }
  0xc5   : > { %v861_v36 = vsel %vm257_vm1, %v820_v56, 0.0  ;;  %v834_v57 = vsel %vm832_vm3, %v833_v7, %v831_v62  ;;  %v863_v3 = vsel %vm257_vm1, %v827_v20, 0.0  ;;  %vm870_vm4 = vcmask 3072  }
  0xc6   : > { %v858_v12 = vadd.f32 %v857_v27, %v856_v18  ;;  %v865_v5 = vsel %vm257_vm1, %v834_v57, 0.0 }
  0xc8   : > { %v860_v40 = vadd.f32 %v859_v16, %v858_v12 }
  0xca   : > { %v862_v35 = vadd.f32 %v861_v36, %v860_v40 }
  0xcc   : > { %v864_v2 = vadd.f32 %v863_v3, %v862_v35 }
  0xce   : > { %v866_v45 = vadd.f32 %v865_v5, %v864_v2 }
  0xd0   : > { %867 = vadd.xlane.f32.xlu0 %v866_v45 }
 0x158   : > { %875 = sbr.rel (%p927_p8) target bundleno = 359 (0x167), region = 36 }
 0x159   : > { %v868_v53 = vpop.xlane.xlu0 %867 }
 0x15a   : > { %v869_v49 = vadd.f32 %v868_v53, %v835_v10 }
 0x15c   : > { %871 = vst.msk [vmem:[#allocation2] sm:$0xf] %vm870_vm4, %v869_v49 }
 0x163   : > { %v876_v44 = vld [vmem:[#allocation2] sm:$0xf] }
 0x164   : > { %v877_v25 = vmul.f32 0.00024414063, %v876_v44 }
 0x166   : > { %878 = vst.msk [vmem:[%s2009_s1] sm:$0xf] %vm870_vm4, %v877_v25 }
 0x167 PF: > { %p11_p1 = scmp.ge.s32.totalorder %s1139_s11, 4   ;;  %s2049_s6 = smov %s1092_s7 }
 0x168   : > { %s2050_s7 = smov %s1096_s8  ;;  %s2051_s8 = smov %s1149_s14 }
 0x169   : > { %s2052_s9 = smov %s1139_s11  ;;  %13 = sbr.rel (!%p11_p1) target bundleno = 3 (0x3), region = 68 }
 0x16e   :  { %890 = vsyncpa [#allocation4], 1 }
 0x16f   :  { %892 = vsyncpa [#allocation4 + $0x1], 1 }

</bundles_post_ra>
